<compile_context>
chip_gen: v6e
topology: v6e:2x2x1
jax: 0.10.0
libtpu: 0.0.40
codegen_flags: <defaults>
</compile_context>

<pallas_src>
import functools

import jax
import jax.numpy as jnp
from jax import lax
from jax.experimental import pallas as pl
from jax.experimental.pallas import tpu as pltpu

_MIB = 1024 * 1024


def _vmem_capacity_bytes():
    """Physical per-core VMEM; falls back to the most restrictive gen (v7x)."""
    try:
        cap = int(pltpu.get_tpu_info().vmem_capacity_bytes)
        if cap >= 16 * _MIB:
            return cap
    except Exception:  # pragma: no cover - CPU / interpret / old runtime
        pass
    return 64 * _MIB


def _pick_hw_tile(hw_padded, c, itemsize, target_bytes):
    """Largest multiple of 128 dividing hw_padded with c*tile*itemsize<=target."""
    cap = max(128, ((target_bytes // max(c * itemsize, 1)) // 128) * 128)
    if hw_padded <= cap:
        return hw_padded
    best = 128
    t = 256
    while t <= cap:
        if hw_padded % t == 0:
            best = t
        t += 128
    return best


# ---------------------------------------------------------------------------
# Fused kernel: Gram accumulation + softmax + (beta * P @ X + X) per batch.
# grid = (B, n_hw); x streamed over HW, X kept resident in VMEM.
# ---------------------------------------------------------------------------
def _fused_cam_kernel(beta_ref, x_ref, o_ref, xs_ref, acc_ref):
    k = pl.program_id(1)
    thw = x_ref.shape[-1]

    @pl.when(k == 0)
    def _():
        acc_ref[...] = jnp.zeros_like(acc_ref)

    xt = x_ref[0]                               # (C, thw), input dtype
    xt_c = xt.astype(xs_ref.dtype)              # MXU operand dtype (bf16 fast path)
    start = pl.multiple_of(k * thw, thw)
    xs_ref[:, pl.ds(start, thw)] = xt_c         # compute-dtype resident slab
    o_ref[0, :, pl.ds(start, thw)] = xt         # exact copy of x for the residual

    # Gram contribution x_tile @ x_tile^T (contract lane dim of both operands).
    acc_ref[...] += lax.dot_general(
        xt_c, xt_c,
        dimension_numbers=(((1,), (1,)), ((), ())),
        preferred_element_type=jnp.float32)

    @pl.when(k == pl.num_programs(1) - 1)
    def _():
        att = acc_ref[...]                                   # (C, C) f32
        # softmax(rowmax(att) - att) == exp(rowmin(att) - att) / rowsum.
        logits = jnp.min(att, axis=-1, keepdims=True) - att  # <= 0, stable
        p = jnp.exp(logits)
        s = jnp.sum(p, axis=-1, keepdims=True)
        inv = pl.reciprocal(s, approx=True)                  # EUP vrcp
        inv = inv * (2.0 - s * inv)                          # one Newton step
        p = (p * inv).astype(xs_ref.dtype)
        feat_e = lax.dot_general(
            p, xs_ref[...],
            dimension_numbers=(((1,), (0,)), ((), ())),
            preferred_element_type=jnp.float32)
        beta = beta_ref[0]
        out = beta * feat_e + o_ref[0].astype(jnp.float32)
        o_ref[0] = out.astype(o_ref.dtype)


# ---------------------------------------------------------------------------
# Two-pass fallback (large per-batch slabs): pass 1 builds P, pass 2 applies it.
# ---------------------------------------------------------------------------
def _gram_softmax_kernel(x_ref, p_ref, acc_ref, *, compute_dtype):
    k = pl.program_id(1)

    @pl.when(k == 0)
    def _():
        acc_ref[...] = jnp.zeros_like(acc_ref)

    xt = x_ref[0].astype(compute_dtype)
    acc_ref[...] += lax.dot_general(
        xt, xt,
        dimension_numbers=(((1,), (1,)), ((), ())),
        preferred_element_type=jnp.float32)

    @pl.when(k == pl.num_programs(1) - 1)
    def _():
        att = acc_ref[...]
        logits = jnp.min(att, axis=-1, keepdims=True) - att
        p = jnp.exp(logits)
        s = jnp.sum(p, axis=-1, keepdims=True)
        inv = pl.reciprocal(s, approx=True)
        inv = inv * (2.0 - s * inv)
        p_ref[0] = (p * inv).astype(p_ref.dtype)


def _apply_attn_kernel(beta_ref, p_ref, x_ref, o_ref, *, compute_dtype):
    beta = beta_ref[0]
    xt = x_ref[0]
    feat_e = lax.dot_general(
        p_ref[0], xt.astype(compute_dtype),
        dimension_numbers=(((1,), (0,)), ((), ())),
        preferred_element_type=jnp.float32)
    o_ref[0] = (beta * feat_e + xt.astype(jnp.float32)).astype(o_ref.dtype)


# ---------------------------------------------------------------------------
# Wrapper
# ---------------------------------------------------------------------------
def channel_attention_module(x, beta, *, tile_hw=None,
                             compute_dtype=jnp.bfloat16, fuse=None):
    """Pallas implementation of _ChannelAttentionModule.forward.

    x            : (B, C, H, W) array (NCHW).
    beta         : scalar / shape-(1,) parameter (torch.zeros(1) init).
    compute_dtype: MXU operand dtype (default bf16 fast path; None => x.dtype).
    fuse         : force fused / two-pass structure (None => auto by VMEM fit).
    """
    B, C, H, W = x.shape
    HW = H * W
    x_dtype = x.dtype
    if compute_dtype is None:
        compute_dtype = jnp.dtype(x_dtype)
    else:
        compute_dtype = jnp.dtype(compute_dtype)
        if jnp.dtype(x_dtype).itemsize < compute_dtype.itemsize:
            compute_dtype = jnp.dtype(x_dtype)   # never upcast the MXU feed

    xf = x.reshape(B, C, HW)
    # Lane-dense tiles for arbitrary H, W: zero-pad HW up to a 128 multiple
    # (zero columns are exact for X X^T and P @ X; padding is sliced off).
    HW_pad = ((HW + 127) // 128) * 128
    if HW_pad != HW:
        xf = jnp.pad(xf, ((0, 0), (0, 0), (0, HW_pad - HW)))

    in_item = jnp.dtype(x_dtype).itemsize
    cd_item = compute_dtype.itemsize

    capacity = _vmem_capacity_bytes()
    vmem_cap = (capacity * 3) // 4                      # headroom for Mosaic internals
    target_tile_bytes = max(2 * _MIB, min(8 * _MIB, capacity // 16))

    if tile_hw is None:
        tile_hw = _pick_hw_tile(HW_pad, C, in_item, target_tile_bytes)
    assert HW_pad % tile_hw == 0, "tile_hw must divide the padded H*W"
    n_hw = HW_pad // tile_hw

    beta_s = jnp.reshape(beta, (1,)).astype(jnp.float32)

    # Fused per-batch working set: streamed tile (2x), resident out block (2x),
    # compute-dtype slab, f32 Gram acc + softmax temps, epilogue f32 transients.
    fused_bytes = (2 * C * tile_hw * in_item
                   + 2 * C * HW_pad * in_item
                   + C * HW_pad * cd_item
                   + 2 * C * HW_pad * 4
                   + 3 * C * C * 4)
    if fuse is None:
        fuse = fused_bytes + 4 * _MIB <= vmem_cap

    if fuse:
        vmem_limit = int(min(vmem_cap, max(32 * _MIB, fused_bytes + 4 * _MIB)))
        out_flat = pl.pallas_call(
            _fused_cam_kernel,
            out_shape=jax.ShapeDtypeStruct((B, C, HW_pad), x_dtype),
            grid=(B, n_hw),
            in_specs=[
                pl.BlockSpec(memory_space=pltpu.MemorySpace.SMEM),        # beta
                pl.BlockSpec((1, C, tile_hw), lambda b, k: (b, 0, k)),    # x tile
            ],
            out_specs=pl.BlockSpec((1, C, HW_pad), lambda b, k: (b, 0, 0)),
            scratch_shapes=[pltpu.VMEM((C, HW_pad), compute_dtype),       # X slab
                            pltpu.VMEM((C, C), jnp.float32)],             # Gram acc
            compiler_params=pltpu.CompilerParams(
                dimension_semantics=("parallel", "arbitrary"),
                vmem_limit_bytes=vmem_limit),
            cost_estimate=pl.CostEstimate(
                flops=4 * B * C * C * HW_pad,
                transcendentals=B * C * C,
                bytes_accessed=2 * B * C * HW_pad * in_item),
        )(beta_s, xf)
    else:
        p_dtype = compute_dtype
        p_item = cd_item
        pass1_bytes = 2 * C * tile_hw * in_item + 2 * C * C * p_item + 3 * C * C * 4
        pass2_bytes = 2 * C * C * p_item + 4 * C * tile_hw * in_item + 2 * C * tile_hw * 4
        vmem_limit = int(min(vmem_cap,
                             max(32 * _MIB, 2 * max(pass1_bytes, pass2_bytes))))

        p_mat = pl.pallas_call(
            functools.partial(_gram_softmax_kernel, compute_dtype=compute_dtype),
            out_shape=jax.ShapeDtypeStruct((B, C, C), p_dtype),
            grid=(B, n_hw),
            in_specs=[pl.BlockSpec((1, C, tile_hw), lambda b, k: (b, 0, k))],
            out_specs=pl.BlockSpec((1, C, C), lambda b, k: (b, 0, 0)),
            scratch_shapes=[pltpu.VMEM((C, C), jnp.float32)],
            compiler_params=pltpu.CompilerParams(
                dimension_semantics=("parallel", "arbitrary"),
                vmem_limit_bytes=vmem_limit),
            cost_estimate=pl.CostEstimate(
                flops=2 * B * C * C * HW_pad,
                transcendentals=B * C * C,
                bytes_accessed=B * C * HW_pad * in_item + B * C * C * p_item),
        )(xf)

        out_flat = pl.pallas_call(
            functools.partial(_apply_attn_kernel, compute_dtype=compute_dtype),
            out_shape=jax.ShapeDtypeStruct((B, C, HW_pad), x_dtype),
            grid=(B, n_hw),
            in_specs=[
                pl.BlockSpec(memory_space=pltpu.MemorySpace.SMEM),        # beta
                pl.BlockSpec((1, C, C), lambda b, j: (b, 0, 0)),          # P resident
                pl.BlockSpec((1, C, tile_hw), lambda b, j: (b, 0, j)),    # x tile
            ],
            out_specs=pl.BlockSpec((1, C, tile_hw), lambda b, j: (b, 0, j)),
            compiler_params=pltpu.CompilerParams(
                dimension_semantics=("parallel", "parallel"),
                vmem_limit_bytes=vmem_limit),
            cost_estimate=pl.CostEstimate(
                flops=2 * B * C * C * HW_pad,
                transcendentals=0,
                bytes_accessed=2 * B * C * HW_pad * in_item + B * C * C * p_item),
        )(beta_s, p_mat, xf)

    if HW_pad != HW:
        out_flat = out_flat[:, :, :HW]
    return out_flat.reshape(B, C, H, W)


# ---------------------------------------------------------------------------
# Pure-JAX reference mirroring the PyTorch forward (optionally with the same
# compute-dtype casts as the kernel's MXU fast path, for apples-to-apples).
# ---------------------------------------------------------------------------
def _reference(x, beta, compute_dtype=None):
    B, C, H, W = x.shape
    feat_a = x.reshape(B, C, H * W)
    fa_c = feat_a if compute_dtype is None else feat_a.astype(compute_dtype)
    att = jnp.einsum("bcn,bdn->bcd", fa_c, fa_c,
                     preferred_element_type=jnp.float32)
    att_new = jnp.max(att, axis=-1, keepdims=True) - att
    p = jax.nn.softmax(att_new, axis=-1)
    if compute_dtype is not None:
        p = p.astype(compute_dtype)
    feat_e = jnp.einsum("bcd,bdn->bcn", p, fa_c,
                        preferred_element_type=jnp.float32)
    out = beta * feat_e + feat_a.astype(jnp.float32)
    return out.reshape(B, C, H, W).astype(x.dtype)


if __name__ == "__main__":
    key = jax.random.PRNGKey(0)
    B, C, H, W = 2, 8, 16, 16
    x = jax.random.normal(key, (B, C, H, W), dtype=jnp.float32)

    # beta = 0 (module init): output must equal x exactly.
    beta0 = jnp.zeros((1,), dtype=jnp.float32)
    out0 = jax.block_until_ready(channel_attention_module(x, beta0))
    ref0 = _reference(x, 0.0, compute_dtype=jnp.bfloat16)
    assert jnp.allclose(out0, ref0, atol=1e-6, rtol=1e-6)

    # Fused path, default bf16 MXU feed (compare against bf16-fed reference).
    beta1 = jnp.full((1,), 0.5, dtype=jnp.float32)
    out1 = jax.block_until_ready(channel_attention_module(x, beta1))
    ref1 = _reference(x, 0.5, compute_dtype=jnp.bfloat16)
    assert jnp.allclose(out1, ref1, atol=1e-2, rtol=1e-2)

    # Fused path, full-precision operands (compute_dtype=None) vs f32 reference.
    out2 = jax.block_until_ready(
        channel_attention_module(x, beta1, compute_dtype=None))
    ref2 = _reference(x, 0.5, compute_dtype=None)
    assert jnp.allclose(out2, ref2, atol=1e-4, rtol=1e-4)

    # Two-pass fallback + HW padding (H*W=140 -> 256) + multi-tile reduction.
    x3 = jax.random.normal(jax.random.PRNGKey(1), (2, 8, 10, 14), jnp.float32)
    beta3 = jnp.full((1,), 0.7, dtype=jnp.float32)
    out3 = jax.block_until_ready(
        channel_attention_module(x3, beta3, tile_hw=128,
                                 compute_dtype=None, fuse=False))
    ref3 = _reference(x3, 0.7, compute_dtype=None)
    assert jnp.allclose(out3, ref3, atol=1e-4, rtol=1e-4)

    # Fused streamed-slab path with several HW tiles (bf16 MXU feed).
    x4 = jax.random.normal(jax.random.PRNGKey(2), (2, 8, 16, 32), jnp.float32)
    beta4 = jnp.full((1,), 0.3, dtype=jnp.float32)
    out4 = jax.block_until_ready(
        channel_attention_module(x4, beta4, tile_hw=128))
    ref4 = _reference(x4, 0.3, compute_dtype=jnp.bfloat16)
    assert jnp.allclose(out4, ref4, atol=1e-2, rtol=1e-2)

    print("KERNEL_OK")
</pallas_src>

<mosaic_0001>
module attributes {stable_mosaic.version = 11 : i64} {
  func.func @_fused_cam_kernel(%arg0: i32, %arg1: i32, %arg2: memref<1xf32, #tpu.memory_space<smem>>, %arg3: memref<1x8x256xf32, #tpu.memory_space<vmem>>, %arg4: memref<1x8x256xf32, #tpu.memory_space<vmem>>, %arg5: memref<8x256xbf16, #tpu.memory_space<vmem>>, %arg6: memref<8x8xf32, #tpu.memory_space<vmem>>) attributes {dimension_semantics = [#tpu.dimension_semantics<parallel>, #tpu.dimension_semantics<arbitrary>], iteration_bounds = array<i64: 2, 1>, scalar_prefetch = 0 : i64, scratch_operands = 2 : i64, tpu.core_type = #tpu.core_type<tc>, window_params = [{transform_indices = @transform_0, window_bounds = array<i64: 1>}, {transform_indices = @transform_1, window_bounds = array<i64: 1, 8, 256>}, {transform_indices = @transform_2, window_bounds = array<i64: 1, 8, 256>}]} {
    %c0_i32 = arith.constant 0 : i32
    %0 = arith.cmpi eq, %arg1, %c0_i32 : i32
    %1 = arith.extui %0 : i1 to i32
    %c0_i32_0 = arith.constant 0 : i32
    %2 = arith.cmpi ne, %1, %c0_i32_0 : i32
    scf.if %2 {
      %cst_12 = arith.constant 0.000000e+00 : f32
      %21 = vector.broadcast %cst_12 : f32 to vector<8x8xf32>
      %c0_13 = arith.constant 0 : index
      %c0_14 = arith.constant 0 : index
      %22 = vector.load %arg6[%c0_13, %c0_14] : memref<8x8xf32, #tpu.memory_space<vmem>>, vector<8x8xf32>
      tpu.vector_store %arg6[%c0_13, %c0_14], %21 {strides = array<i32>} : memref<8x8xf32, #tpu.memory_space<vmem>>, vector<8x8xf32>,
    } else {
    }
    %c0 = arith.constant 0 : index
    %c0_1 = arith.constant 0 : index
    %c0_2 = arith.constant 0 : index
    %3 = vector.load %arg3[%c0, %c0_1, %c0_2] : memref<1x8x256xf32, #tpu.memory_space<vmem>>, vector<1x8x256xf32>
    %4 = vector.shape_cast %3 : vector<1x8x256xf32> to vector<8x256xf32>
    %5 = arith.truncf %4 : vector<8x256xf32> to vector<8x256xbf16>
    %c256_i32 = arith.constant 256 : i32
    %6 = arith.muli %arg1, %c256_i32 : i32
    %7 = tpu.assume_multiple %6, 256 : i32
    %c0_3 = arith.constant 0 : index
    %8 = arith.index_cast %7 : i32 to index
    %9 = vector.load %arg5[%c0_3, %8] : memref<8x256xbf16, #tpu.memory_space<vmem>>, vector<8x256xbf16>
    tpu.vector_store %arg5[%c0_3, %8], %5 {strides = array<i32>} : memref<8x256xbf16, #tpu.memory_space<vmem>>, vector<8x256xbf16>,
    %c0_4 = arith.constant 0 : index
    %c0_5 = arith.constant 0 : index
    %10 = arith.index_cast %7 : i32 to index
    %11 = vector.load %arg4[%c0_4, %c0_5, %10] : memref<1x8x256xf32, #tpu.memory_space<vmem>>, vector<1x8x256xf32>
    %12 = vector.shape_cast %11 : vector<1x8x256xf32> to vector<8x256xf32>
    %13 = vector.shape_cast %4 : vector<8x256xf32> to vector<1x8x256xf32>
    tpu.vector_store %arg4[%c0_4, %c0_5, %10], %13 {strides = array<i32>} : memref<1x8x256xf32, #tpu.memory_space<vmem>>, vector<1x8x256xf32>,
    %c0_6 = arith.constant 0 : index
    %c0_7 = arith.constant 0 : index
    %14 = vector.load %arg6[%c0_6, %c0_7] : memref<8x8xf32, #tpu.memory_space<vmem>>, vector<8x8xf32>
    %cst = arith.constant dense<0.000000e+00> : vector<8x8xf32>
    %15 = tpu.matmul %5, %5, %cst {dimension_numbers = #tpu.dot_dimension_numbers<[1], [1], [0], [0], [0, 0, 1, 0], [], []>} : vector<8x256xbf16>, vector<8x256xbf16>, vector<8x8xf32> -> vector<8x8xf32>
    %16 = arith.addf %14, %15 : vector<8x8xf32>
    %c0_8 = arith.constant 0 : index
    %c0_9 = arith.constant 0 : index
    %17 = vector.load %arg6[%c0_8, %c0_9] : memref<8x8xf32, #tpu.memory_space<vmem>>, vector<8x8xf32>
    tpu.vector_store %arg6[%c0_8, %c0_9], %16 {strides = array<i32>} : memref<8x8xf32, #tpu.memory_space<vmem>>, vector<8x8xf32>,
    %c0_i32_10 = arith.constant 0 : i32
    %18 = arith.cmpi eq, %arg1, %c0_i32_10 : i32
    %19 = arith.extui %18 : i1 to i32
    %c0_i32_11 = arith.constant 0 : i32
    %20 = arith.cmpi ne, %19, %c0_i32_11 : i32
    scf.if %20 {
      %c0_12 = arith.constant 0 : index
      %c0_13 = arith.constant 0 : index
      %21 = vector.load %arg6[%c0_12, %c0_13] : memref<8x8xf32, #tpu.memory_space<vmem>>, vector<8x8xf32>
      %cst_14 = arith.constant dense<0x7F800000> : vector<8xf32>
      %22 = vector.multi_reduction <minimumf>, %21, %cst_14 [1] : vector<8x8xf32> to vector<8xf32>
      %23 = vector.shape_cast %22 : vector<8xf32> to vector<8x1xf32>
      %24 = vector.broadcast %23 : vector<8x1xf32> to vector<8x8xf32>
      %25 = arith.subf %24, %21 : vector<8x8xf32>
      %26 = math.exp %25 : vector<8x8xf32>
      %cst_15 = arith.constant dense<0.000000e+00> : vector<8xf32>
      %27 = vector.multi_reduction <add>, %26, %cst_15 [1] : vector<8x8xf32> to vector<8xf32>
      %28 = vector.shape_cast %27 : vector<8xf32> to vector<8x1xf32>
      %29 = tpu.reciprocal %28 {approx = true} : vector<8x1xf32> -> vector<8x1xf32>
      %30 = arith.mulf %28, %29 : vector<8x1xf32>
      %cst_16 = arith.constant 2.000000e+00 : f32
      %31 = vector.broadcast %cst_16 : f32 to vector<8x1xf32>
      %32 = arith.subf %31, %30 : vector<8x1xf32>
      %33 = arith.mulf %29, %32 : vector<8x1xf32>
      %34 = vector.broadcast %33 : vector<8x1xf32> to vector<8x8xf32>
      %35 = arith.mulf %26, %34 : vector<8x8xf32>
      %36 = arith.truncf %35 : vector<8x8xf32> to vector<8x8xbf16>
      %c0_17 = arith.constant 0 : index
      %c0_18 = arith.constant 0 : index
      %37 = vector.load %arg5[%c0_17, %c0_18] : memref<8x256xbf16, #tpu.memory_space<vmem>>, vector<8x256xbf16>
      %cst_19 = arith.constant dense<0.000000e+00> : vector<8x256xf32>
      %38 = tpu.matmul %36, %37, %cst_19 {dimension_numbers = #tpu.dot_dimension_numbers<[1], [0], [0], [1], [0, 0, 1, 1], [], []>} : vector<8x8xbf16>, vector<8x256xbf16>, vector<8x256xf32> -> vector<8x256xf32>
      %c0_20 = arith.constant 0 : index
      %39 = memref.load %arg2[%c0_20] : memref<1xf32, #tpu.memory_space<smem>>
      %40 = vector.broadcast %39 : f32 to vector<8x256xf32>
      %41 = arith.mulf %40, %38 : vector<8x256xf32>
      %c0_21 = arith.constant 0 : index
      %c0_22 = arith.constant 0 : index
      %c0_23 = arith.constant 0 : index
      %42 = vector.load %arg4[%c0_21, %c0_22, %c0_23] : memref<1x8x256xf32, #tpu.memory_space<vmem>>, vector<1x8x256xf32>
      %43 = vector.shape_cast %42 : vector<1x8x256xf32> to vector<8x256xf32>
      %44 = arith.addf %41, %43 : vector<8x256xf32>
      %c0_24 = arith.constant 0 : index
      %c0_25 = arith.constant 0 : index
      %c0_26 = arith.constant 0 : index
      %45 = vector.load %arg4[%c0_24, %c0_25, %c0_26] : memref<1x8x256xf32, #tpu.memory_space<vmem>>, vector<1x8x256xf32>
      %46 = vector.shape_cast %45 : vector<1x8x256xf32> to vector<8x256xf32>
      %47 = vector.shape_cast %44 : vector<8x256xf32> to vector<1x8x256xf32>
      tpu.vector_store %arg4[%c0_24, %c0_25, %c0_26], %47 {strides = array<i32>} : memref<1x8x256xf32, #tpu.memory_space<vmem>>, vector<1x8x256xf32>,
    } else {
    }
    return
  }
  func.func @transform_0(%arg0: i32, %arg1: i32) -> i32 {
    %c0_i32 = arith.constant 0 : i32
    %c0_i32_0 = arith.constant 0 : i32
    return %c0_i32 : i32
  }
  func.func @transform_1(%arg0: i32, %arg1: i32) -> (i32, i32, i32) {
    %c0_i32 = arith.constant 0 : i32
    %c0_i32_0 = arith.constant 0 : i32
    return %arg0, %c0_i32, %arg1 : i32, i32, i32
  }
  func.func @transform_2(%arg0: i32, %arg1: i32) -> (i32, i32, i32) {
    %c0_i32 = arith.constant 0 : i32
    %c0_i32_0 = arith.constant 0 : i32
    %c0_i32_1 = arith.constant 0 : i32
    return %arg0, %c0_i32, %c0_i32_0 : i32, i32, i32
  }
}

</mosaic_0001>

<bundles_post_ra>
// kernel: tpu_custom_call.1
= control target key start
LH: loop header
LB: loop body
LE: loop exit
PB: predicated region body
PF: predicated region fallthrough
CT: control target
= control target key end

     0   :  { %s809_s0 = inlined_call_operand.<no memory space> [shape: f32[1], index: 0, kind: input, shape index: {}]   ;;  %s810_s1 = inlined_call_operand.hbm [shape: f32[2,8,256], index: 1, kind: input, shape index: {}]   ;;  %s811_s2 = inlined_call_operand.hbm [shape: f32[2,8,256], index: 2, kind: output, shape index: {}]  }
   0x1   :  { %7 = sst [smem:[#allocation4]] %s809_s0 }
   0x2   :  { %8 = vsyncpa [#allocation6], 0 }
   0x3   :  { %10 = vsyncpa [#allocation6 + $0x1], 0 }
   0x4   :  { %11 = vsyncpa [#allocation7], 0 }
   0x5   :  { %13 = vsyncpa [#allocation7 + $0x1], 0  ;;  %s660_s11 = smov 0   ;;  %s662_s12 = smov 0  }
   0x6   :  { %s664_s13 = smov 0   ;;  %s666_s14 = smov 0  }
   0x7   :  { %s668_s15 = smov 0   ;;  %s670_s16 = smov 0  }
   0x8 LB: > { %s435_s0 = sadd.s32 4294967295, %s636_s16   ;;  %s436_s17 = sadd.s32 4294967294, %s636_s16   ;;  %s636_s16 = sphi %s670_s16, %s19_s16   ;;  %s632_s15 = sphi %s668_s15, %s823_s15   ;;  %s628_s14 = sphi %s666_s14, %s822_s14   ;;  %s624_s13 = sphi %s664_s13, %s821_s13   ;;  %s620_s12 = sphi %s662_s12, %s820_s12   ;;  %s616_s11 = sphi %s660_s11, %s819_s11  }
   0x9   : > { %s31_s18 = sadd.s32 1, %s632_s15  ;;  %s61_s19 = sadd.s32 1, %s624_s13 }
   0xa   : > { %p33_p0 = scmp.ge.s32.totalorder %s31_s18, 2  ;;  %p68_p1 = scmp.ne.s32.totalorder %s624_s13, %s620_s12 }
   0xb   : > { %p69_p2 = scmp.eq.s32.totalorder %s636_s16, 0  ;;  %p74_p3 = scmp.ne.s32.totalorder %s620_s12, %s616_s11 }
   0xc   : > { %s825_s18 = smov (%p33_p0, %s31_s18), 0  ;;  %p75_p5 = scmp.eq.s32.totalorder %s435_s0, 0 }
   0xd   : > { %p701_p4 = por %p69_p2, %p68_p1  ;;  %s56_s21 = ssub.s32 %s632_s15, %s825_s18 }
   0xe   : > { %p98_p6 = scmp.eq.s32.totalorder %s435_s0, 1  ;;  %p59_p7 = scmp.eq.s32.totalorder %s56_s21, 0 }
   0xf   : > { %p707_p8 = por %p75_p5, %p74_p3  ;;  %p104_p10 = scmp.eq.s32.totalorder %s436_s17, 1 }
  0x10   : > { %p711_p9 = por %p98_p6, %p68_p1  ;;  %p472_p13 = scmp.lt.s32.totalorder %s636_s16, 2 }
  0x11   : > { %s716_s24 = scalar_select %p59_p7, %s624_s13, %s61_s19  }
  0x12   : > { %p718_p11 = por %p104_p10, %p74_p3  ;;  %s127_s26 = sand.u32 1, %s624_s13  }
  0x13   : > { %s439_s27 = sshll.u32 %s127_s26, 4  ;;  %s455_s28 = sshll.u32 %s632_s15, 8 }
  0x14   : > { %s815_s25 = scalar_select %p718_p11, 1, 0 }
  0x15   : > { %s139_s3 = scalar_lea.hbm %s810_s1, %s455_s28  ;;  %s131_s4 = scalar_lea.vmem [#allocation5], %s439_s27 }
  0x16   : > { %s141_s5 = sshll.u32 %s131_s4, 4  ;;  %p731_p0 = pnand %p472_p13, %p701_p4  ;;  %s142_s5 = int_to_ptr.vmem [resolvable:$true] %s141_s5 }
  0x17   : > { %p442_p1 = scmp.ge.s32.totalorder %s636_s16, 1  ;;  %p146_p2 = scmp.lt.s32.totalorder %s636_s16, 3 }
  0x18   : > { %s128_s7 = scalar_lea.sflag [#allocation6], %s127_s26  ;;  %p530_p3 = pneg %p731_p0 }
  0x19   : > { %s541_s8 = scalar_lea.vmem %s142_s5, 256  ;;  %s638_s9 = smov [#allocation5]  }
  0x1a   : > { %p542_p5 = scmp.ne.s32.totalorder %s142_s5, %s541_s8  ;;  %s546_s10 = sshll.u32 %s638_s9, 4  ;;  %s547_s10 = int_to_ptr.vmem [resolvable:$false] %s546_s10 }
  0x1b   : > { %s548_s0 = scalar_lea.vmem %s547_s10, 512  ;;  %p549_p10 = scmp.lt.s32.totalorder %s142_s5, %s547_s10 }
  0x1c   : > { %p544_p6 = pnand %p542_p5, %p530_p3  ;;  %p550_p12 = scmp.lt.s32.totalorder %s548_s0, %s541_s8 }
  0x1e   : > { %p545_p7 = pneg %p544_p6  ;;  %p551_p4 = por %p550_p12, %p549_p10 }
  0x20   : > { %p552_p13 = pnand %p551_p4, %p545_p7 }
  0x22   : > { %555 = shalt.err (!%p552_p13)
}
  0x23   : > { %467 = dma.hbm_to_vmem [thread:$0]  (!%p731_p0), %s139_s3, 256, %s142_s5, %s128_s7  }
  0x24   : > { %p147_p11 = pnand %p442_p1, %p146_p2 }
  0x25   : > { %s746_s17 = sand.u32 (!%p147_p11), 1, %s620_s12  }
  0x26   : > { %150 = sbr.rel (%p147_p11) target bundleno = 790 (0x316), region = 28  ;;  %s443_s19 = sshll.u32 (!%p147_p11), %s746_s17, 4 }
  0x27   : > { %s153_s20 = scalar_lea.sflag (!%p147_p11), [#allocation6], %s746_s17  ;;  %s156_s21 = scalar_lea.vmem (!%p147_p11), [#allocation5], %s443_s19 }
  0x2b   : > { %607 = dma.done.wait (%p707_p8), %s153_s20, 256  }
  0x2c   : > { %609 = vsyncadd (%p707_p8), %s153_s20, 4294967040  ;;  %vm183_vm0 = vcmask 64512   ;;  %v639_v0 = vmov 0.0   ;;  %v186_v1 = vld [vmem:[%s156_s21 + $0x8] sm:$0xff]  ;;  %v185_v2 = vld [vmem:[%s156_s21] sm:$0xff]  ;;  %vm277_vm1 = vcmask 1043456  }
  0x2d   : > { %184 = vst.msk [vmem:[#allocation3] sm:$0xff] %vm183_vm0, %v639_v0  ;;  %v188_v3 = vpack.c.bf16 %v186_v1, %v186_v1  ;;  %v187_v4 = vpack.c.bf16 %v185_v2, %v185_v2  ;;  %v640_v19 = vmov 0   ;;  %s325_s22 = sld [smem:[#allocation4]]  ;;  %s457_s26 = sshll.u32 %s628_s14, 8 }
  0x2e   : > { %316 = vmatprep.mubr.bf16.mxu1 %v640_v19  ;;  %s176_s27 = scalar_lea.vmem [#allocation8], %s443_s19  ;;  %s767_s3 = scalar_lea.hbm %s811_s2, %s457_s26 }
  0x2f   : > { %220 = vmatprep.subr.bf16.mxu0 %v188_v3  ;;  %238 = vmatprep.mubr.bf16.mxu0 %v188_v3  ;;  %v279_v18 = vsel %vm277_vm1, %v187_v4, 0  ;;  %s350_s28 = sshll.u32 %s176_s27, 4  ;;  %s336_s4 = scalar_lea.sflag [#allocation7], %s746_s17  ;;  %s351_s28 = int_to_ptr.vmem [resolvable:$true] %s350_s28 }
  0x30   : > { %221 = vmatpush1.bf16.xpose.msra.mxu0 %v187_v4  ;;  %448 = vmatprep.subr.msk.bf16.mxu1 %vm277_vm1, %v188_v3  ;;  %s556_s5 = scalar_lea.vmem %s351_s28, 256  ;;  %s641_s14 = smov [#allocation8]  }
  0x31   : > { %299 = vmatpush1.bf16.msra.mxu1 %v279_v18  ;;  %p557_p8 = scmp.ne.s32.totalorder %s351_s28, %s556_s5  ;;  %s560_s6 = sshll.u32 %s641_s14, 4  ;;  %s561_s6 = int_to_ptr.vmem [resolvable:$false] %s560_s6 }
  0x32   : > { %s562_s7 = scalar_lea.vmem %s561_s6, 512  ;;  %p563_p0 = scmp.lt.s32.totalorder %s351_s28, %s561_s6 }
  0x33   : > { %v326_v27 = vstv %s325_s22  ;;  %p558_p11 = pnand %p557_p8, %p711_p9  ;;  %p564_p1 = scmp.lt.s32.totalorder %s562_s7, %s556_s5 }
  0x34   : > { %v205_v5 = vld [vmem:[#allocation3] sm:$0xff] }
  0x35   : > { %p559_p12 = pneg %p558_p11  ;;  %p565_p2 = por %p564_p1, %p563_p0 }
  0x37   : > { %239 = vmatmul.mubr.bf16.vlgmr.msra.gmra.mxu0 %v187_v4  ;;  %p566_p3 = pnand %p565_p2, %p559_p12 }
  0xf7   : > { %v240_v6 = vpop.f32.mrf.mxu0 }
  0xf8   : > { %v246_v7 = vadd.f32 %v240_v6, %v205_v5 }
  0xf9   : > { %v242_v8 = vpop.f32.mrf.mxu0 }
  0xfa   : > { %248 = vst.msk [vmem:[#allocation3] sm:$0xff] %vm183_vm0, %v246_v7 }
  0xfb   : > { %v243_v9 = vpop.f32.mrf.mxu0 }
  0xfd   : > { %v244_v10 = vpop.f32.mrf.mxu0 }
 0x101   : > { %v252_v11 = vld [vmem:[#allocation3] sm:$0xff] }
 0x102   : > { %v253_v12 = vsel %vm183_vm0, %v252_v11, inf }
 0x103   : > { %254 = vmin.xlane.f32.xlu0 %v253_v12 }
 0x18c   : > { %v255_v13 = vpop.xlane.xlu0 %254 }
 0x18d   : > { %v256_v14 = vsub.f32 %v255_v13, %v252_v11 }
 0x18f   : > { %v257_v15 = vmul.f32 1.442695, %v256_v14 }
 0x191   : > { %524 = vpow2.f32 %v257_v15 }
 0x19e   : > { %v525_v16 = vpop.eup %524 }
 0x19f   : > { %v259_v17 = vsel %vm183_vm0, %v525_v16, 0.0 }
 0x1a0   : > { %260 = vadd.xlane.f32.xlu0 %v259_v17 }
 0x229   : > { %v261_v20 = vpop.xlane.xlu0 %260 }
 0x22a   : > { %526 = vrcp.f32 %v261_v20 }
 0x237   : > { %v527_v21 = vpop.eup %526 }
 0x238   : > { %v263_v22 = vmul.f32 %v527_v21, %v261_v20 }
 0x23a   : > { %v264_v23 = vsub.f32 2.0, %v263_v22 }
 0x23c   : > { %v265_v24 = vmul.f32 %v527_v21, %v264_v23 }
 0x23e   : > { %v266_v25 = vmul.f32 %v525_v16, %v265_v24 }
 0x240   : > { %v267_v26 = vpack.c.bf16 %v266_v25, %v266_v25 }
 0x242   : > { %449 = vmatmul.mubr.msk.bf16.vlgmr.msra.gmra.mxu1 %vm183_vm0, %v267_v26 }
 0x302   : > { %v318_v28 = vpop.f32.mrf.mxu1 }
 0x303   : > { %v327_v29 = vmul.f32 %v326_v27, %v318_v28 }
 0x304   : > { %v320_v30 = vpop.f32.mrf.mxu1 }
 0x305   : > { %v331_v31 = vadd.f32 %v327_v29, %v185_v2  ;;  %v328_v32 = vmul.f32 %v326_v27, %v320_v30 }
 0x306   : > { %v322_v33 = vpop.f32.mrf.mxu1 }
 0x307   : > { %333 = vst [vmem:[%s176_s27] sm:$0xff] %v331_v31  ;;  %v332_v34 = vadd.f32 %v328_v32, %v186_v1 }
 0x308   : > { %v323_v35 = vpop.f32.mrf.mxu1 }
 0x309   : > { %334 = vst [vmem:[%s176_s27 + $0x8] sm:$0xff] %v332_v34 }
 0x30a   : > { %569 = shalt.err (!%p566_p3)
}
 0x30b   : > { %s570_s8 = scalar_lea.hbm %s767_s3, 256  ;;  %s574_s0 = scalar_lea.hbm %s811_s2, 512 }
 0x30c   : > { %p571_p5 = scmp.ne.s32.totalorder %s767_s3, %s570_s8  ;;  %p575_p10 = scmp.lt.s32.totalorder %s767_s3, %s811_s2 }
 0x30d   : > { %p576_p4 = scmp.lt.s32.totalorder %s574_s0, %s570_s8 }
 0x30e   : > { %p572_p6 = pnand %p571_p5, %p711_p9 }
 0x30f   : > { %p577_p13 = por %p576_p4, %p575_p10 }
 0x310   : > { %p573_p7 = pneg %p572_p6 }
 0x312   : > { %p578_p8 = pnand %p577_p13, %p573_p7 }
 0x314   : > { %581 = shalt.err (!%p578_p8)
}
 0x315   : > { %462 = dma.vmem_to_hbm [thread:$0]  (%p711_p9), %s351_s28, 256, %s767_s3, %s336_s4  }
 0x316 PF: > { %s362_s20 = sand.u32 1, %s616_s11   ;;  %p817_p11 = scmp.ne.s32.totalorder %s815_s25, 0 }
 0x317   : > { %p818_p12 = scmp.ge.s32.totalorder %s636_s16, 2  ;;  %s363_s21 = scalar_lea.sflag [#allocation7], %s362_s20 }
 0x319   : > { %p469_p0 = pnand %p818_p12, %p817_p11 }
 0x31b   : > { %p470_p1 = pneg %p469_p0 }
 0x31d   : > { %611 = dma.done.wait (%p470_p1), %s363_s21, 256  }
 0x31e   : > { %613 = vsyncadd (%p470_p1), %s363_s21, 4294967040  ;;  %s19_s16 = sadd.s32 1, %s636_s16   ;;  %s819_s11 = smov %s620_s12 }
 0x31f   : > { %p16_p2 = scmp.ge.s32.totalorder %s19_s16, 4   ;;  %s820_s12 = smov %s624_s13 }
 0x320   : > { %s821_s13 = smov %s716_s24  ;;  %s822_s14 = smov %s632_s15 }
 0x321   : > { %s823_s15 = smov %s825_s18  ;;  %18 = sbr.rel (!%p16_p2) target bundleno = 8 (0x8), region = 83 }
 0x326   :  { %368 = vsyncpa [#allocation6], 1 }
 0x327   :  { %370 = vsyncpa [#allocation6 + $0x1], 1 }
 0x328   :  { %371 = vsyncpa [#allocation7], 1 }
 0x329   :  { %373 = vsyncpa [#allocation7 + $0x1], 1 }

</bundles_post_ra>
